<compile_context>
chip_gen: v7x
topology: tpu7x:2x2x1
jax: 0.10.0
libtpu: 0.0.40
codegen_flags: <defaults>
</compile_context>

<pallas_src>
import functools

import jax
import jax.numpy as jnp
from jax.experimental import pallas as pl
from jax.experimental.pallas import tpu as pltpu


def _au_kernel(w_ref, sig_ref, gate_ref, out_ref, *, accum_dtype):
    """One (batch, row-tile) step.

    w_ref:    SMEM (Cg,) f32   -- scalar-prefetched 1x1-conv weights (num_masks == 1)
    sig_ref:  VMEM (1, Cs, Tr, 128)
    gate_ref: VMEM (1, Cg, Tr, 128)
    out_ref:  VMEM (1, Cs, Tr, 128)
    """
    gate = gate_ref[0]                                   # (Cg, Tr, 128)
    cg = gate.shape[0]

    # Weighted channel sum == 1x1 conv with a single output mask.  The channel
    # axis is a leading (non-layout) axis, so every multiply/add below is a
    # dense (Tr, 128) VPU op; Cg is small & static so the loop unrolls.
    logits = w_ref[0].astype(accum_dtype) * gate[0].astype(accum_dtype)
    for c in range(1, cg):
        logits = logits + w_ref[c].astype(accum_dtype) * gate[c].astype(accum_dtype)

    # Sigmoid in f32 on the EUP.  NOTE: on a ragged last row-tile the unused
    # rows hold garbage; that's fine (no cross-row/lane reduction happens and
    # Pallas masks the store of those rows).  Do not add reductions over Tr.
    attn = jax.nn.sigmoid(logits.astype(jnp.float32))    # (Tr, 128)

    sig = sig_ref[0]                                     # (Cs, Tr, 128) native dtype
    scale = (1.0 + attn).astype(sig.dtype)               # bf16 stays bf16 on v6e/v7x
    out_ref[0] = (sig * scale).astype(out_ref.dtype)     # free leading-axis broadcast


def _vmem_budget_and_limit():
    """Generation-aware VMEM budget for the tiled working set plus the scoped
    vmem limit handed to Mosaic.  v5e/v6e: 128 MiB physical VMEM; v7x: only
    64 MiB (32 MiB scoped default), so re-derive per chip."""
    try:
        cap = pltpu.get_tpu_info().vmem_capacity_bytes
    except Exception:
        cap = 64 << 20                                   # conservative fallback
    if cap >= (100 << 20):                               # v5e / v6e class
        return 28 << 20, 64 << 20
    return 16 << 20, 48 << 20                            # v7x class


def _accum_dtype(gate_dtype):
    """bf16 channel sums are fine on bf16-capable VPUs (v6e/v7x); v5-and-older
    chips have no bf16 VALU, so keep f32 there (and for all non-bf16 inputs)."""
    if jnp.dtype(gate_dtype) != jnp.dtype(jnp.bfloat16):
        return jnp.float32
    try:
        kind = jax.devices()[0].device_kind.lower()
    except Exception:
        return jnp.float32
    if any(v in kind for v in ("v2", "v3", "v4", "v5")):
        return jnp.float32
    return jnp.bfloat16


def _choose_row_tile(rows, n_batch, cs, cg, sig_item, gate_item, budget_bytes):
    """Row-tile (sublane) size: as large as the budget allows (fewer grid
    steps, longer contiguous DMA rows), multiple of 8 when actually tiling,
    and split so there are >= 2 pixel tiles when the grid would otherwise be
    tiny (v7x megacore sharding + DMA/compute overlap)."""
    # Bytes per row of 128 lanes for signal + output + gate, double-buffered.
    # Tr is kept a multiple of 8 (or the full extent), so there is no hidden
    # sublane-padding factor; signal/gate itemsizes are accounted separately.
    per_row = 2 * 128 * (2 * cs * sig_item + cg * gate_item)
    cap = max(8, (budget_bytes // per_row) // 8 * 8)
    tr = rows if rows <= cap else cap
    if n_batch * pl.cdiv(rows, tr) < 4 and rows >= 16:
        half = (((rows + 1) // 2) + 7) // 8 * 8          # ceil(rows/2), mult of 8
        tr = min(tr, half)
    return tr


@jax.jit
def au_forward(signal_nchw, gate_nchw, weight):
    """signal: (N, Cs, H, W), gate: (N, Cg, H, W),
    weight: (M, Cg) or (M, Cg, 1, 1) (PyTorch 1x1-conv layout), M == 1."""
    N, Cs, H, W = signal_nchw.shape
    Ng, Cg, Hg, Wg = gate_nchw.shape
    assert (N, H, W) == (Ng, Hg, Wg)
    weight = weight.reshape(weight.shape[0], -1)         # (M, Cg)
    if weight.shape[0] != 1:
        # TODO(synk): general num_masks > 1 (PyTorch broadcast only valid for M==1 or M==Cs).
        raise NotImplementedError("au_forward currently supports num_masks == 1.")

    HW = H * W
    rows = pl.cdiv(HW, 128)
    hw_pad = rows * 128

    # Free reshapes: pixels land 128-per-row on the lane axis, rows on the
    # sublane axis, channels on a leading (non-layout) axis.
    sig = signal_nchw.reshape(N, Cs, HW)
    gat = gate_nchw.reshape(N, Cg, HW)
    if hw_pad != HW:
        # TODO(synk): a dedicated ragged-lane path would avoid this HBM pad copy.
        sig = jnp.pad(sig, ((0, 0), (0, 0), (0, hw_pad - HW)))
        gat = jnp.pad(gat, ((0, 0), (0, 0), (0, hw_pad - HW)))
    sig = sig.reshape(N, Cs, rows, 128)
    gat = gat.reshape(N, Cg, rows, 128)
    w = weight.reshape(Cg).astype(jnp.float32)           # scalar-prefetched weights

    budget, vmem_limit = _vmem_budget_and_limit()
    tr = _choose_row_tile(
        rows, N, Cs, Cg,
        jnp.dtype(signal_nchw.dtype).itemsize,
        jnp.dtype(gate_nchw.dtype).itemsize,
        budget)
    grid = (N, pl.cdiv(rows, tr))                        # ragged last tile is masked

    kernel = functools.partial(_au_kernel, accum_dtype=_accum_dtype(gate_nchw.dtype))
    out = pl.pallas_call(
        kernel,
        out_shape=jax.ShapeDtypeStruct((N, Cs, rows, 128), signal_nchw.dtype),
        grid_spec=pltpu.PrefetchScalarGridSpec(
            num_scalar_prefetch=1,                       # w -> SMEM once, before the grid
            grid=grid,
            in_specs=[
                pl.BlockSpec((1, Cs, tr, 128), lambda n, p, w_ref: (n, 0, p, 0)),
                pl.BlockSpec((1, Cg, tr, 128), lambda n, p, w_ref: (n, 0, p, 0)),
            ],
            out_specs=pl.BlockSpec((1, Cs, tr, 128), lambda n, p, w_ref: (n, 0, p, 0)),
        ),
        compiler_params=pltpu.CompilerParams(
            dimension_semantics=("parallel", "parallel"),
            vmem_limit_bytes=vmem_limit,
        ),
    )(w, sig, gat)

    out = out.reshape(N, Cs, hw_pad)
    if hw_pad != HW:
        out = out[:, :, :HW]
    return out.reshape(N, Cs, H, W)


def au_reference(signal_nchw, gate_nchw, weight):
    """Pure-JAX reference of the PyTorch forward (conv1x1 -> sigmoid -> scale)."""
    weight = weight.reshape(weight.shape[0], -1)
    attn = jax.nn.sigmoid(jnp.einsum("nchw,mc->nmhw", gate_nchw, weight))
    return signal_nchw * (1.0 + attn)


if __name__ == "__main__":
    key = jax.random.PRNGKey(0)
    k_sig, k_gate, k_w = jax.random.split(key, 3)

    N, C, H, W = 2, 4, 16, 16
    num_masks = 1

    signal = jax.random.normal(k_sig, (N, C, H, W), dtype=jnp.float32)
    gate = jax.random.normal(k_gate, (N, C, H, W), dtype=jnp.float32)
    # Deterministic "kaiming-ish" init for the 1x1 conv weight (M, Cg).
    weight = jax.random.normal(k_w, (num_masks, C), dtype=jnp.float32) * (1.0 / jnp.sqrt(C))

    out = jax.block_until_ready(au_forward(signal, gate, weight))
    ref = au_reference(signal, gate, weight)
    assert out.shape == (N, C, H, W)
    assert jnp.allclose(out, ref, atol=1e-5, rtol=1e-5)

    # Also exercise the HW-not-divisible-by-128 (padded) path.
    H2, W2 = 10, 10
    sig2 = jax.random.normal(k_sig, (1, C, H2, W2), dtype=jnp.float32)
    gat2 = jax.random.normal(k_gate, (1, C, H2, W2), dtype=jnp.float32)
    out2 = jax.block_until_ready(au_forward(sig2, gat2, weight))
    assert jnp.allclose(out2, au_reference(sig2, gat2, weight), atol=1e-5, rtol=1e-5)

    print("KERNEL_OK")
</pallas_src>

<mosaic_0001>
module attributes {stable_mosaic.version = 11 : i64} {
  func.func @_au_kernel(%arg0: i32, %arg1: i32, %arg2: memref<4xf32, #tpu.memory_space<smem>>, %arg3: memref<1x4x2x128xf32, #tpu.memory_space<vmem>>, %arg4: memref<1x4x2x128xf32, #tpu.memory_space<vmem>>, %arg5: memref<1x4x2x128xf32, #tpu.memory_space<vmem>>) attributes {dimension_semantics = [#tpu.dimension_semantics<parallel>, #tpu.dimension_semantics<parallel>], iteration_bounds = array<i64: 2, 1>, scalar_prefetch = 1 : i64, scratch_operands = 0 : i64, tpu.core_type = #tpu.core_type<tc>, window_params = [{transform_indices = @transform_0, window_bounds = array<i64: 1, 4, 2, 128>}, {transform_indices = @transform_1, window_bounds = array<i64: 1, 4, 2, 128>}, {transform_indices = @transform_2, window_bounds = array<i64: 1, 4, 2, 128>}]} {
    %c0 = arith.constant 0 : index
    %c0_0 = arith.constant 0 : index
    %c0_1 = arith.constant 0 : index
    %c0_2 = arith.constant 0 : index
    %0 = vector.load %arg4[%c0, %c0_0, %c0_1, %c0_2] : memref<1x4x2x128xf32, #tpu.memory_space<vmem>>, vector<1x4x2x128xf32>
    %1 = vector.shape_cast %0 : vector<1x4x2x128xf32> to vector<4x2x128xf32>
    %c0_3 = arith.constant 0 : index
    %2 = memref.load %arg2[%c0_3] : memref<4xf32, #tpu.memory_space<smem>>
    %3 = vector.extract_strided_slice %1 {offsets = [0, 0, 0], sizes = [1, 2, 128], strides = [1, 1, 1]} : vector<4x2x128xf32> to vector<1x2x128xf32>
    %4 = vector.shape_cast %3 : vector<1x2x128xf32> to vector<2x128xf32>
    %5 = vector.broadcast %2 : f32 to vector<2x128xf32>
    %6 = arith.mulf %5, %4 : vector<2x128xf32>
    %c1 = arith.constant 1 : index
    %7 = memref.load %arg2[%c1] : memref<4xf32, #tpu.memory_space<smem>>
    %8 = vector.extract_strided_slice %1 {offsets = [1, 0, 0], sizes = [1, 2, 128], strides = [1, 1, 1]} : vector<4x2x128xf32> to vector<1x2x128xf32>
    %9 = vector.shape_cast %8 : vector<1x2x128xf32> to vector<2x128xf32>
    %10 = vector.broadcast %7 : f32 to vector<2x128xf32>
    %11 = arith.mulf %10, %9 : vector<2x128xf32>
    %12 = arith.addf %6, %11 : vector<2x128xf32>
    %c2 = arith.constant 2 : index
    %13 = memref.load %arg2[%c2] : memref<4xf32, #tpu.memory_space<smem>>
    %14 = vector.extract_strided_slice %1 {offsets = [2, 0, 0], sizes = [1, 2, 128], strides = [1, 1, 1]} : vector<4x2x128xf32> to vector<1x2x128xf32>
    %15 = vector.shape_cast %14 : vector<1x2x128xf32> to vector<2x128xf32>
    %16 = vector.broadcast %13 : f32 to vector<2x128xf32>
    %17 = arith.mulf %16, %15 : vector<2x128xf32>
    %18 = arith.addf %12, %17 : vector<2x128xf32>
    %c3 = arith.constant 3 : index
    %19 = memref.load %arg2[%c3] : memref<4xf32, #tpu.memory_space<smem>>
    %20 = vector.extract_strided_slice %1 {offsets = [3, 0, 0], sizes = [1, 2, 128], strides = [1, 1, 1]} : vector<4x2x128xf32> to vector<1x2x128xf32>
    %21 = vector.shape_cast %20 : vector<1x2x128xf32> to vector<2x128xf32>
    %22 = vector.broadcast %19 : f32 to vector<2x128xf32>
    %23 = arith.mulf %22, %21 : vector<2x128xf32>
    %24 = arith.addf %18, %23 : vector<2x128xf32>
    %25 = arith.negf %24 : vector<2x128xf32>
    %26 = math.exp %25 : vector<2x128xf32>
    %cst = arith.constant 1.000000e+00 : f32
    %27 = vector.broadcast %cst : f32 to vector<2x128xf32>
    %28 = arith.addf %27, %26 : vector<2x128xf32>
    %29 = arith.divf %27, %28 : vector<2x128xf32>
    %c0_4 = arith.constant 0 : index
    %c0_5 = arith.constant 0 : index
    %c0_6 = arith.constant 0 : index
    %c0_7 = arith.constant 0 : index
    %30 = vector.load %arg3[%c0_4, %c0_5, %c0_6, %c0_7] : memref<1x4x2x128xf32, #tpu.memory_space<vmem>>, vector<1x4x2x128xf32>
    %31 = vector.shape_cast %30 : vector<1x4x2x128xf32> to vector<4x2x128xf32>
    %cst_8 = arith.constant 1.000000e+00 : f32
    %32 = vector.broadcast %cst_8 : f32 to vector<2x128xf32>
    %33 = arith.addf %32, %29 : vector<2x128xf32>
    %34 = vector.shape_cast %33 : vector<2x128xf32> to vector<1x2x128xf32>
    %35 = vector.broadcast %34 : vector<1x2x128xf32> to vector<4x2x128xf32>
    %36 = arith.mulf %31, %35 : vector<4x2x128xf32>
    %c0_9 = arith.constant 0 : index
    %c0_10 = arith.constant 0 : index
    %c0_11 = arith.constant 0 : index
    %c0_12 = arith.constant 0 : index
    %37 = vector.load %arg5[%c0_9, %c0_10, %c0_11, %c0_12] : memref<1x4x2x128xf32, #tpu.memory_space<vmem>>, vector<1x4x2x128xf32>
    %38 = vector.shape_cast %37 : vector<1x4x2x128xf32> to vector<4x2x128xf32>
    %39 = vector.shape_cast %36 : vector<4x2x128xf32> to vector<1x4x2x128xf32>
    tpu.vector_store %arg5[%c0_9, %c0_10, %c0_11, %c0_12], %39 {strides = array<i32>} : memref<1x4x2x128xf32, #tpu.memory_space<vmem>>, vector<1x4x2x128xf32>,
    return
  }
  func.func @transform_0(%arg0: i32, %arg1: i32, %arg2: memref<4xf32, #tpu.memory_space<smem>>) -> (i32, i32, i32, i32) {
    %c0_i32 = arith.constant 0 : i32
    %c0_i32_0 = arith.constant 0 : i32
    %c0_i32_1 = arith.constant 0 : i32
    return %arg0, %c0_i32, %arg1, %c0_i32_0 : i32, i32, i32, i32
  }
  func.func @transform_1(%arg0: i32, %arg1: i32, %arg2: memref<4xf32, #tpu.memory_space<smem>>) -> (i32, i32, i32, i32) {
    %c0_i32 = arith.constant 0 : i32
    %c0_i32_0 = arith.constant 0 : i32
    %c0_i32_1 = arith.constant 0 : i32
    return %arg0, %c0_i32, %arg1, %c0_i32_0 : i32, i32, i32, i32
  }
  func.func @transform_2(%arg0: i32, %arg1: i32, %arg2: memref<4xf32, #tpu.memory_space<smem>>) -> (i32, i32, i32, i32) {
    %c0_i32 = arith.constant 0 : i32
    %c0_i32_0 = arith.constant 0 : i32
    %c0_i32_1 = arith.constant 0 : i32
    return %arg0, %c0_i32, %arg1, %c0_i32_0 : i32, i32, i32, i32
  }
}

</mosaic_0001>

<bundles_post_ra>
// kernel: au_forward.1
= control target key start
LH: loop header
LB: loop body
LE: loop exit
PB: predicated region body
PF: predicated region fallthrough
CT: control target
= control target key end

     0   :  { %s504_s0 = inlined_call_operand.vmem [shape: f32[4], index: 0, kind: input, shape index: {}]   ;;  %s505_s1 = inlined_call_operand.vmem [shape: f32[2,4,2,128], index: 1, kind: input, shape index: {}]   ;;  %s506_s2 = inlined_call_operand.vmem [shape: f32[2,4,2,128], index: 2, kind: input, shape index: {}]   ;;  %s507_s3 = inlined_call_operand.vmem [shape: f32[2,4,2,128], index: 3, kind: output, shape index: {}]  }
   0x1   :  { %s8_s14 = sshll.u32 %s504_s0, 4  ;;  %s9_s14 = int_to_ptr.vmem [resolvable:$true] %s8_s14 }
   0x2   :  { %s401_s15 = scalar_lea.vmem %s9_s14, 16  ;;  %p406_p1 = scmp.lt.s32.totalorder %s9_s14, %s9_s14 }
   0x3   :  { %p402_p0 = scmp.ne.s32.totalorder %s9_s14, %s401_s15  ;;  %p407_p2 = scmp.lt.s32.totalorder %s401_s15, %s401_s15 }
   0x5   :  { %p408_p3 = por %p407_p2, %p406_p1 }
   0x7   :  { %p409_p4 = pnand %p408_p3, %p402_p0 }
   0x9   :  { %412 = shalt.err (!%p409_p4)  }
   0xa   :  { %s439_s16 = smov [#allocation3]  }
   0xb   :  { %11 = dma.vmem_to_smem %s9_s14, 16, %s439_s16, [#allocation2] }
   0xc   :  { %425 = dma.done.wait [#allocation2], 16 }
   0xd   :  { %426 = vsyncadd [#allocation2], 4294967280 }
   0xe   :  { %13 = sfence }
   0xf   :  { %s463_s17 = smov 0   ;;  %s465_s18 = smov 0  }
  0x10   :  { %s467_s19 = smov 0  }
  0x11 LB: > { %s31_s0 = sadd.s32 1, %s433_s18  ;;  %p356_p5 = scmp.ge.s32.totalorder %s437_s19, 1  ;;  %s437_s19 = sphi %s467_s19, %s19_s19   ;;  %s433_s18 = sphi %s465_s18, %s509_s18   ;;  %s429_s17 = sphi %s463_s17, %s508_s17  }
  0x12   : > { %p33_p6 = scmp.ge.s32.totalorder %s31_s0, 2  ;;  %p153_p7 = scmp.lt.s32.totalorder %s437_s19, 3 }
  0x14   : > { %s511_s0 = smov (%p33_p6, %s31_s0), 0  ;;  %p154_p8 = pnand %p356_p5, %p153_p7 }
  0x15   : > { %p189_p9 = scmp.lt.s32.totalorder (!%p154_p8), %s429_s17, 1  ;;  %s217_s20 = sld [smem:[#allocation3]] (!%p154_p8) }
  0x16   : > { %157 = sbr.rel (%p154_p8) target bundleno = 73 (0x49), region = 28  ;;  %s363_s21 = sld [smem:[#allocation3 + $0x1]] (!%p154_p8) }
  0x17   : > { %s364_s22 = sld [smem:[#allocation3 + $0x2]] (!%p154_p8)  ;;  %s365_s23 = sld [smem:[#allocation3 + $0x3]] (!%p154_p8) }
  0x1b   : > { %v218_v3 = vstv (!%p154_p8), %s217_s20 }
  0x1c   : > { %v221_v6 = vstv (!%p154_p8), %s363_s21 }
  0x1d   : > { %s513_s17 = smov (!%p189_p9, %s429_s17), 1  ;;  %v225_v7 = vstv %s364_s22  ;;  %v229_v10 = vstv %s365_s23 }
  0x1e   : > { %s481_s24 = sshll.u32 %s513_s17, 3 }
  0x1f   : > { %s204_s27 = scalar_lea.vmem %s506_s2, %s481_s24  ;;  %s196_s30 = scalar_lea.vmem %s505_s1, %s481_s24 }
  0x20   : > { %v213_v0 = vld [vmem:[%s204_s27] sm:$0x3]  ;;  %v214_v1 = vld [vmem:[%s204_s27 + $0x2] sm:$0x3]  ;;  %v215_v2 = vld [vmem:[%s204_s27 + $0x4] sm:$0x3]  ;;  %s212_s6 = scalar_lea.vmem %s507_s3, %s481_s24 }
  0x21   : > { %v216_v4 = vld [vmem:[%s204_s27 + $0x6] sm:$0x3]  ;;  %v219_v5 = vmul.f32 %v218_v3, %v213_v0  ;;  %v222_v8 = vmul.f32 %v221_v6, %v214_v1  ;;  %v226_v9 = vmul.f32 %v225_v7, %v215_v2  ;;  %v238_v18 = vld [vmem:[%s196_s30] sm:$0x3]  ;;  %v239_v20 = vld [vmem:[%s196_s30 + $0x2] sm:$0x3] }
  0x22   : > { %v230_v12 = vmul.f32 %v229_v10, %v216_v4  ;;  %v240_v21 = vld [vmem:[%s196_s30 + $0x4] sm:$0x3]  ;;  %v241_v22 = vld [vmem:[%s196_s30 + $0x6] sm:$0x3] }
  0x23   : > { %v223_v11 = vadd.f32 %v222_v8, %v219_v5 }
  0x25   : > { %v227_v13 = vadd.f32 %v226_v9, %v223_v11 }
  0x27   : > { %v231_v14 = vadd.f32 %v230_v12, %v227_v13 }
  0x29   : > { %v366_v15 = vmul.f32 -1.442695, %v231_v14 }
  0x2b   : > { %397 = vpow2.f32 %v366_v15 }
  0x35   : > { %v398_v16 = vpop.eup %397 }
  0x36   : > { %v235_v17 = vadd.f32 1.0, %v398_v16 }
  0x38   : > { %399 = vrcp.f32 %v235_v17 }
  0x42   : > { %v400_v19 = vpop.eup %399 }
  0x43   : > { %v242_v23 = vadd.f32 1.0, %v400_v19 }
  0x45   : > { %v243_v24 = vmul.f32 %v242_v23, %v238_v18  ;;  %v244_v25 = vmul.f32 %v242_v23, %v239_v20  ;;  %v245_v26 = vmul.f32 %v242_v23, %v240_v21  ;;  %v246_v27 = vmul.f32 %v242_v23, %v241_v22 }
  0x47   : > { %247 = vst [vmem:[%s212_s6] sm:$0x3] %v243_v24  ;;  %248 = vst [vmem:[%s212_s6 + $0x2] sm:$0x3] %v244_v25 }
  0x48   : > { %249 = vst [vmem:[%s212_s6 + $0x4] sm:$0x3] %v245_v26  ;;  %250 = vst [vmem:[%s212_s6 + $0x6] sm:$0x3] %v246_v27 }
  0x49 PF: > { %s19_s19 = sadd.s32 1, %s437_s19   ;;  %s508_s17 = smov %s433_s18 }
  0x4a   : > { %p16_p10 = scmp.ge.s32.totalorder %s19_s19, 4   ;;  %s509_s18 = smov %s511_s0 }
  0x4c   :  { %18 = sbr.rel (!%p16_p10) target bundleno = 17 (0x11), region = 61 }

</bundles_post_ra>
